<compile_context>
chip_gen: v7x
topology: tpu7x:2x2x1
jax: 0.10.0
libtpu: 0.0.40
codegen_flags: <defaults>
</compile_context>

<pallas_src>
import jax
import jax.numpy as jnp
from jax.experimental import pallas as pl
from jax.experimental.pallas import tpu as pltpu

LANE = 128
SUBLANE = 8


def feedforward_kernel(x_ref, w2_ref, b2_ref, out_ref):
    # x_ref  : (TM, H)     bf16  -- gathered rows of table = emb @ w1 + b1
    # w2_ref : (H, O_pad)  bf16  -- resident across the whole grid
    # b2_ref : (1, O_pad)  f32   -- resident
    # out_ref: (TM, O_pad) f32
    # ReLU in f32 on the VPU (exact for max-with-0; v5e has no bf16 VPU).
    h = jnp.maximum(x_ref[...].astype(jnp.float32), 0.0)
    # TODO(synk): training-mode dropout (p=0.5) omitted; eval-mode dropout is identity.
    # Linear 2 on the MXU: bf16 operands, f32 accumulation.
    y = jnp.dot(h.astype(jnp.bfloat16), w2_ref[...],
                preferred_element_type=jnp.float32)
    out_ref[...] = (y + b2_ref[...]).astype(out_ref.dtype)


def prepare_params(emb, w1, b1, w2, b2):
    """One-time fold/pad of the static weights (do NOT re-run per forward)."""
    # Fold Embedding + Linear1 + b1: gather(emb)[i] @ w1 + b1 == (emb @ w1 + b1)[ids[i]].
    table = (emb.astype(jnp.float32) @ w1.astype(jnp.float32)
             + b1.astype(jnp.float32)[None, :]).astype(jnp.bfloat16)        # (V, H)
    H, O = w2.shape
    o_pad = max(LANE, pl.cdiv(O, LANE) * LANE)
    w2_p = jnp.zeros((H, o_pad), jnp.bfloat16).at[:, :O].set(w2.astype(jnp.bfloat16))
    b2_p = jnp.zeros((1, o_pad), jnp.float32).at[:, :O].set(b2.astype(jnp.float32))
    return table, w2_p, b2_p, O


def feedforward(ids, table, w2_p, b2_p, out_size, *, tm=256):
    """ids: (B, S) int ids. Returns (B, S, out_size) float32 (eval-mode forward)."""
    B, S = ids.shape
    N = B * S
    H = table.shape[1]
    o_pad = w2_p.shape[1]

    # Round TM down to the problem size for tiny inputs, keep it a multiple of 8.
    tm = min(tm, max(SUBLANE, pl.cdiv(N, SUBLANE) * SUBLANE))
    n_pad = pl.cdiv(N, tm) * tm
    n_tiles = n_pad // tm

    # One big contiguous gather in the wrapper (instead of N tiny descriptor-bound DMAs).
    ids_flat = ids.reshape(N).astype(jnp.int32)
    ids_pad = jnp.zeros((n_pad,), jnp.int32).at[:N].set(ids_flat)
    x = jnp.take(table, ids_pad, axis=0)                                    # (n_pad, H) bf16

    cost = pl.CostEstimate(
        flops=2 * n_pad * H * o_pad,
        transcendentals=0,
        bytes_accessed=(n_pad * H * 2            # activations in (bf16)
                        + H * o_pad * 2          # w2 (bf16)
                        + o_pad * 4              # b2 (f32)
                        + n_pad * o_pad * 4),    # output (f32)
    )

    out = pl.pallas_call(
        feedforward_kernel,
        out_shape=jax.ShapeDtypeStruct((n_pad, o_pad), jnp.float32),
        grid_spec=pltpu.PrefetchScalarGridSpec(
            num_scalar_prefetch=0,
            grid=(n_tiles,),
            in_specs=[
                pl.BlockSpec((tm, H), lambda i: (i, 0)),        # activation tile
                pl.BlockSpec((H, o_pad), lambda i: (0, 0)),     # w2 (resident)
                pl.BlockSpec((1, o_pad), lambda i: (0, 0)),     # b2 (resident)
            ],
            out_specs=pl.BlockSpec((tm, o_pad), lambda i: (i, 0)),
        ),
        compiler_params=pltpu.CompilerParams(
            dimension_semantics=("parallel",),                  # row tiles split across TCs
            vmem_limit_bytes=64 * 1024 * 1024,
        ),
        cost_estimate=cost,
    )(x, w2_p, b2_p)

    return out[:N, :out_size].reshape(B, S, out_size)


def reference(ids, emb, w1, b1, w2, b2):
    e = jnp.take(emb, ids, axis=0)
    h = jnp.maximum(e @ w1 + b1, 0.0)
    return h @ w2 + b2


if __name__ == "__main__":
    # Module hyperparameters (small, deterministic).
    vocab_size, embedding_size, hidden_size, output_size = 32, 16, 32, 8
    B, S = 2, 8

    key = jax.random.PRNGKey(0)
    k_ids, k_emb, k_w1, k_b1, k_w2, k_b2 = jax.random.split(key, 6)

    ids = jax.random.randint(k_ids, (B, S), 0, vocab_size, dtype=jnp.int32)

    # Parameters stored as (in, out) so the forward does x @ W + b
    # (equivalent to PyTorch's x @ weight.T + bias).
    emb = jax.random.normal(k_emb, (vocab_size, embedding_size), dtype=jnp.float32)
    w1 = jax.random.normal(k_w1, (embedding_size, hidden_size), dtype=jnp.float32) * 0.1
    b1 = jax.random.normal(k_b1, (hidden_size,), dtype=jnp.float32) * 0.1
    w2 = jax.random.normal(k_w2, (hidden_size, output_size), dtype=jnp.float32) * 0.1
    b2 = jax.random.normal(k_b2, (output_size,), dtype=jnp.float32) * 0.1

    # One-time weight fold / pad (cache these across forward calls).
    table, w2_p, b2_p, out_size = prepare_params(emb, w1, b1, w2, b2)

    y = feedforward(ids, table, w2_p, b2_p, out_size)
    y = jax.block_until_ready(y)

    y_ref = reference(ids, emb, w1, b1, w2, b2)
    assert y.shape == (B, S, output_size), y.shape
    # Folded table and w2 are fed to the MXU as bf16 (f32 accumulation) -> bf16 tolerance.
    assert jnp.allclose(y, y_ref, atol=2.5e-2, rtol=2.5e-2), "mismatch vs reference"

    print("KERNEL_OK")
</pallas_src>

<mosaic_0001>
module attributes {stable_mosaic.version = 11 : i64} {
  func.func @feedforward_kernel(%arg0: i32, %arg1: memref<16x32xbf16, #tpu.memory_space<vmem>>, %arg2: memref<32x128xbf16, #tpu.memory_space<vmem>>, %arg3: memref<1x128xf32, #tpu.memory_space<vmem>>, %arg4: memref<16x128xf32, #tpu.memory_space<vmem>>) attributes {dimension_semantics = [#tpu.dimension_semantics<parallel>], iteration_bounds = array<i64: 1>, scalar_prefetch = 0 : i64, scratch_operands = 0 : i64, tpu.core_type = #tpu.core_type<tc>, window_params = [{transform_indices = @transform_0, window_bounds = array<i64: 16, 32>}, {pipeline_mode = #tpu.pipeline_mode<synchronous>, transform_indices = @transform_1, window_bounds = array<i64: 32, 128>}, {pipeline_mode = #tpu.pipeline_mode<synchronous>, transform_indices = @transform_2, window_bounds = array<i64: 1, 128>}, {transform_indices = @transform_3, window_bounds = array<i64: 16, 128>}]} {
    %c0 = arith.constant 0 : index
    %c0_0 = arith.constant 0 : index
    %0 = vector.load %arg1[%c0, %c0_0] : memref<16x32xbf16, #tpu.memory_space<vmem>>, vector<16x32xbf16>
    %1 = arith.extf %0 : vector<16x32xbf16> to vector<16x32xf32>
    %cst = arith.constant 0.000000e+00 : f32
    %2 = vector.broadcast %cst : f32 to vector<16x32xf32>
    %3 = arith.maximumf %1, %2 : vector<16x32xf32>
    %4 = arith.truncf %3 : vector<16x32xf32> to vector<16x32xbf16>
    %c0_1 = arith.constant 0 : index
    %c0_2 = arith.constant 0 : index
    %5 = vector.load %arg2[%c0_1, %c0_2] : memref<32x128xbf16, #tpu.memory_space<vmem>>, vector<32x128xbf16>
    %cst_3 = arith.constant dense<0.000000e+00> : vector<16x128xf32>
    %6 = tpu.matmul %4, %5, %cst_3 {dimension_numbers = #tpu.dot_dimension_numbers<[1], [0], [0], [1], [0, 0, 1, 1], [], []>} : vector<16x32xbf16>, vector<32x128xbf16>, vector<16x128xf32> -> vector<16x128xf32>
    %c0_4 = arith.constant 0 : index
    %c0_5 = arith.constant 0 : index
    %7 = vector.load %arg3[%c0_4, %c0_5] : memref<1x128xf32, #tpu.memory_space<vmem>>, vector<1x128xf32>
    %8 = vector.broadcast %7 : vector<1x128xf32> to vector<16x128xf32>
    %9 = arith.addf %6, %8 : vector<16x128xf32>
    %c0_6 = arith.constant 0 : index
    %c0_7 = arith.constant 0 : index
    %10 = vector.load %arg4[%c0_6, %c0_7] : memref<16x128xf32, #tpu.memory_space<vmem>>, vector<16x128xf32>
    tpu.vector_store %arg4[%c0_6, %c0_7], %9 {strides = array<i32>} : memref<16x128xf32, #tpu.memory_space<vmem>>, vector<16x128xf32>,
    return
  }
  func.func @transform_0(%arg0: i32) -> (i32, i32) {
    %c0_i32 = arith.constant 0 : i32
    %c0_i32_0 = arith.constant 0 : i32
    return %arg0, %c0_i32 : i32, i32
  }
  func.func @transform_1(%arg0: i32) -> (i32, i32) {
    %c0_i32 = arith.constant 0 : i32
    %c0_i32_0 = arith.constant 0 : i32
    %c0_i32_1 = arith.constant 0 : i32
    return %c0_i32, %c0_i32_0 : i32, i32
  }
  func.func @transform_2(%arg0: i32) -> (i32, i32) {
    %c0_i32 = arith.constant 0 : i32
    %c0_i32_0 = arith.constant 0 : i32
    %c0_i32_1 = arith.constant 0 : i32
    return %c0_i32, %c0_i32_0 : i32, i32
  }
  func.func @transform_3(%arg0: i32) -> (i32, i32) {
    %c0_i32 = arith.constant 0 : i32
    %c0_i32_0 = arith.constant 0 : i32
    return %arg0, %c0_i32 : i32, i32
  }
}

</mosaic_0001>

<bundles_post_ra>
// kernel: tpu_custom_call.1
= control target key start
LH: loop header
LB: loop body
LE: loop exit
PB: predicated region body
PF: predicated region fallthrough
CT: control target
= control target key end

     0   :  { %8 = vsyncpa [#allocation3], 0  ;;  %s360_s0 = inlined_call_operand.hbm [shape: bf16[16,32], index: 0, kind: input, shape index: {}]   ;;  %s361_s1 = inlined_call_operand.hbm [shape: bf16[32,128], index: 1, kind: input, shape index: {}]   ;;  %s362_s2 = inlined_call_operand.hbm [shape: f32[1,128], index: 2, kind: input, shape index: {}]   ;;  %s363_s3 = inlined_call_operand.hbm [shape: f32[16,128], index: 3, kind: output, shape index: {}]  }
   0x1   :  { %9 = vsyncpa [#allocation6], 0 }
   0x2   :  { %10 = vsyncpa [#allocation4], 0  ;;  %s275_s12 = smov [#allocation5]   ;;  %s276_s14 = smov [#allocation2]  }
   0x3   :  { %s28_s13 = sshll.u32 %s275_s12, 4  ;;  %s16_s15 = sshll.u32 %s276_s14, 4  ;;  %s29_s13 = int_to_ptr.vmem [resolvable:$true] %s28_s13  ;;  %s305_s15 = int_to_ptr.vmem [resolvable:$true] %s16_s15 }
   0x4   :  { %s181_s18 = scalar_lea.hbm %s361_s1, 256 }
   0x5   :  { %p182_p0 = scmp.ne.s32.totalorder %s361_s1, %s181_s18  ;;  %p185_p1 = scmp.lt.u32.totalorder %s181_s18, %s361_s1 }
   0x7   :  { %p187_p2 = pnand %p185_p1, %p182_p0 }
   0x9   :  { %190 = shalt.err (!%p187_p2)
}
   0xa   :  { %s191_s23 = scalar_lea.vmem %s29_s13, 256  ;;  %p196_p4 = scmp.lt.s32.totalorder %s29_s13, %s29_s13 }
   0xb   :  { %p192_p3 = scmp.ne.s32.totalorder %s29_s13, %s191_s23  ;;  %p197_p5 = scmp.lt.s32.totalorder %s191_s23, %s191_s23 }
   0xd   :  { %p198_p6 = por %p197_p5, %p196_p4 }
   0xf   :  { %p199_p7 = pnand %p198_p6, %p192_p3 }
  0x11   :  { %202 = shalt.err (!%p199_p7)
}
  0x12   :  { %s277_s24 = smov 64   ;;  %s278_s25 = smov 4  }
  0x13   :  { %34 = dma.hbm_to_vmem [thread:$0]  %s361_s1, 256, %s29_s13, [#allocation6], %s277_s24, %s277_s24, %s278_s25  }
  0x14   :  { %s203_s30 = scalar_lea.hbm %s360_s0, 128 }
  0x15   :  { %p204_p8 = scmp.ne.s32.totalorder %s360_s0, %s203_s30  ;;  %p207_p9 = scmp.lt.u32.totalorder %s203_s30, %s360_s0 }
  0x17   :  { %p209_p10 = pnand %p207_p9, %p204_p8 }
  0x19   :  { %212 = shalt.err (!%p209_p10)
}
  0x1a   :  { %s213_s8 = scalar_lea.vmem %s305_s15, 128  ;;  %p218_p12 = scmp.lt.s32.totalorder %s305_s15, %s305_s15 }
  0x1b   :  { %p214_p11 = scmp.ne.s32.totalorder %s305_s15, %s213_s8  ;;  %p219_p13 = scmp.lt.s32.totalorder %s213_s8, %s213_s8 }
  0x1d   :  { %p220_p0 = por %p219_p13, %p218_p12 }
  0x1f   :  { %p221_p1 = pnand %p220_p0, %p214_p11 }
  0x21   :  { %224 = shalt.err (!%p221_p1)
}
  0x22   :  { %22 = dma.hbm_to_vmem [thread:$0]  %s360_s0, 128, %s305_s15, [#allocation3], %s277_s24, %s277_s24, %s278_s25  }
  0x23   :  { %s279_s10 = smov [#allocation7]   ;;  %s225_s14 = scalar_lea.hbm %s362_s2, 16 }
  0x24   :  { %s41_s11 = sshll.u32 %s279_s10, 4  ;;  %p226_p2 = scmp.ne.s32.totalorder %s362_s2, %s225_s14  ;;  %s42_s11 = int_to_ptr.vmem [resolvable:$true] %s41_s11 }
  0x25   :  { %p229_p3 = scmp.lt.u32.totalorder %s225_s14, %s362_s2 }
  0x27   :  { %p231_p4 = pnand %p229_p3, %p226_p2 }
  0x29   :  { %234 = shalt.err (!%p231_p4)
}
  0x2a   :  { %s235_s20 = scalar_lea.vmem %s42_s11, 16  ;;  %s239_s0 = scalar_lea.vmem %s42_s11, 32 }
  0x2b   :  { %p236_p5 = scmp.ne.s32.totalorder %s42_s11, %s235_s20  ;;  %p240_p6 = scmp.lt.s32.totalorder %s42_s11, %s42_s11 }
  0x2c   :  { %p241_p7 = scmp.lt.s32.totalorder %s239_s0, %s235_s20 }
  0x2e   :  { %p242_p8 = por %p241_p7, %p240_p6 }
  0x30   :  { %p243_p9 = pnand %p242_p8, %p236_p5 }
  0x32   :  { %246 = shalt.err (!%p243_p9)
}
  0x33   :  { %44 = dma.hbm_to_vmem [thread:$0]  %s362_s2, 16, %s42_s11, [#allocation6]  }
  0x34   :  { %269 = dma.done.wait [#allocation3], 128  }
  0x35   :  { %270 = vsyncadd [#allocation3], 4294967168 }
  0x36   :  { %271 = dma.done.wait [#allocation6], 272  }
  0x37   :  { %272 = vsyncadd [#allocation6], 4294967024  ;;  %v280_v0 = vmov 0.0   ;;  %vm281_vm0 = vmmov 0   ;;  %v179_v1 = vld [vmem:[#allocation5] sm:$0xff]   ;;  %v180_v2 = vld [vmem:[#allocation5 + $0x8] sm:$0xff]  }
  0x38   :  { %161 = vmatprep.subr.bf16.mxu0 %v280_v0  ;;  %165 = vmatprep.mubr.msk.bf16.mxu0 %vm281_vm0, %v280_v0  ;;  %v155_v3 = vld [vmem:[#allocation2] sm:$0xff]   ;;  %vm85_vm1 = vcmask 261120   ;;  %v150_v9 = vld [vmem:[#allocation7] ss:$0 sm:$0xff]  ;;  %s282_s2 = smov [#allocation8]  }
  0x39   :  { %162 = vmatpush3.bf16.msra.mxu0 %v179_v1  ;;  %v156_v4 = vunpack.c.l.bf16 %v155_v3  ;;  %v157_v5 = vunpack.c.h.bf16 %v155_v3  ;;  %s137_s22 = sshll.u32 %s282_s2, 4  ;;  %s138_s22 = int_to_ptr.vmem [resolvable:$true] %s137_s22 }
  0x3a   :  { %163 = vmatprep.subr.bf16.mxu0 %v280_v0  ;;  %s247_s23 = scalar_lea.vmem %s138_s22, 256  ;;  %p252_p11 = scmp.lt.s32.totalorder %s138_s22, %s138_s22 }
  0x3b   :  { %v59_v6 = vmax.f32 %v156_v4, 0.0  ;;  %v60_v7 = vmax.f32 %v157_v5, 0.0  ;;  %p248_p10 = scmp.ne.s32.totalorder %s138_s22, %s247_s23  ;;  %p253_p12 = scmp.lt.s32.totalorder %s247_s23, %s247_s23 }
  0x3d   :  { %164 = vmatpush3.bf16.msra.mxu0 %v180_v2  ;;  %v61_v8 = vpack.c.bf16 %v60_v7, %v59_v6  ;;  %p254_p13 = por %p253_p12, %p252_p11 }
  0x3f   :  { %p255_p0 = pnand %p254_p13, %p248_p10 }
  0x40   :  { %166 = vmatmul.mubr.msk.bf16.vlgmr.msra.gmra.mrb[0].mxu0 %vm85_vm1, %v61_v8 }
 0x113   :  { %v123_v10 = vpop.f32.mrb[0].mxu0 }
 0x114   :  { %v124_v11 = vadd.f32 %v150_v9, %v123_v10  ;;  %v167_v12 = vpop.f32.mrb[1].mxu0 }
 0x115   :  { %v126_v13 = vpop.f32.mrb[2].mxu0 }
 0x116   :  { %130 = vst [vmem:[#allocation8] sm:$0xff] %v124_v11  ;;  %v127_v14 = vadd.f32 %v150_v9, %v126_v13  ;;  %v168_v15 = vpop.f32.mrb[3].mxu0 }
 0x118   :  { %131 = vst [vmem:[#allocation8 + $0x8] sm:$0xff] %v127_v14 }
 0x119   :  { %258 = shalt.err (!%p255_p0)
}
 0x11a   :  { %s259_s26 = scalar_lea.hbm %s363_s3, 256 }
 0x11b   :  { %p260_p1 = scmp.ne.s32.totalorder %s363_s3, %s259_s26  ;;  %p263_p2 = scmp.lt.u32.totalorder %s259_s26, %s363_s3 }
 0x11d   :  { %p265_p3 = pnand %p263_p2, %p260_p1 }
 0x11f   :  { %268 = shalt.err (!%p265_p3)
}
 0x120   :  { %s283_s4 = smov 128   ;;  %s284_s5 = smov 8  }
 0x121   :  { %143 = dma.vmem_to_hbm [thread:$0]  %s138_s22, 256, %s363_s3, [#allocation4], %s283_s4, %s283_s4, %s284_s5  }
 0x122   :  { %273 = dma.done.wait [#allocation4], 256  }
 0x123   :  { %274 = vsyncadd [#allocation4], 4294967040 }
 0x124   :  { %147 = vsyncpa [#allocation3], 1 }
 0x125   :  { %148 = vsyncpa [#allocation6], 1 }
 0x126   :  { %149 = vsyncpa [#allocation4], 1 }

</bundles_post_ra>
